<compile_context>
chip_gen: v6e
topology: v6e:2x2x1
jax: 0.10.0
libtpu: 0.0.40
codegen_flags: <defaults>
</compile_context>

<pallas_src>
import functools

import jax
import jax.numpy as jnp
from jax.experimental import pallas as pl
from jax.experimental.pallas import tpu as pltpu


# ---------------------------------------------------------------------------
# Tile policy
# ---------------------------------------------------------------------------
DEF_TM = 512
DEF_TN = 512
DEF_TK = 1024

# Cap the kernel's VMEM footprint so it fits every generation, including v7x's
# 64 MiB physical VMEM per TensorCore (v5e/v6e have 128 MiB).
_VMEM_BUDGET = 48 * 1024 * 1024


def _round_up(x: int, m: int) -> int:
    return ((x + m - 1) // m) * m


def _pick_tile(dim: int, default: int, slack: float = 1.5) -> int:
    """Pick a 128-aligned tile for `dim`.

    If the whole (128-rounded) dim is within `slack` of the default tile, use it
    directly so the dim collapses to ONE block with minimal padding (cuts wasted
    MACs / HBM traffic and, for small batch M, means the weight is read once).
    """
    full = _round_up(dim, 128)
    if full <= int(default * slack):
        return full
    return default


def _footprint_bytes(tm, tn, tk, in_bytes, out_bytes) -> int:
    # double-buffered x + double-buffered w + double-buffered out + f32 acc
    return (2 * tm * tk * in_bytes
            + 2 * tk * tn * in_bytes
            + 2 * tm * tn * out_bytes
            + tm * tn * 4)


def _shrink_to_fit(tm, tn, tk, in_bytes, out_bytes, budget):
    """Safety net: shrink tiles (K first) until the VMEM footprint fits."""
    while _footprint_bytes(tm, tn, tk, in_bytes, out_bytes) > budget and tk > 128:
        tk = max(128, _round_up(tk // 2, 128))
    while _footprint_bytes(tm, tn, tk, in_bytes, out_bytes) > budget and tn > 128:
        tn = max(128, _round_up(tn // 2, 128))
    while _footprint_bytes(tm, tn, tk, in_bytes, out_bytes) > budget and tm > 128:
        tm = max(128, _round_up(tm // 2, 128))
    return tm, tn, tk


# ---------------------------------------------------------------------------
# Kernel
# ---------------------------------------------------------------------------
def _mylinear_kernel(x_ref, w_ref, o_ref, acc_ref):
    # x_ref: (tm, tk), w_ref: (tk, tn), o_ref: (tm, tn), acc_ref: (tm, tn) f32
    @pl.when(pl.program_id(2) == 0)
    def _():
        acc_ref[...] = jnp.zeros_like(acc_ref)

    acc_ref[...] += jnp.dot(
        x_ref[...], w_ref[...], preferred_element_type=jnp.float32
    )

    @pl.when(pl.program_id(2) == pl.num_programs(2) - 1)
    def _():
        o_ref[...] = acc_ref[...].astype(o_ref.dtype)


# ---------------------------------------------------------------------------
# Wrapper (weight already in (K, N) layout, possibly pre-padded)
# ---------------------------------------------------------------------------
@functools.partial(
    jax.jit, static_argnames=("n_out", "tm", "tn", "tk", "use_bf16")
)
def _forward_kn(x, w_kn, *, n_out=None, tm=DEF_TM, tn=DEF_TN, tk=DEF_TK,
                use_bf16=False):
    """y = x @ w_kn, where w_kn is the weight in (K, N) layout (possibly padded).

    x:     (M, K)
    w_kn:  (Kw, Nw) with Kw >= K, Nw >= n_out  (extra rows/cols are zeros)
    returns (M, n_out) in x.dtype.
    """
    M, Kx = x.shape
    Kw, Nw = w_kn.shape
    if n_out is None:
        n_out = Nw

    out_dtype = x.dtype
    compute_dtype = jnp.bfloat16 if use_bf16 else x.dtype
    xc = x.astype(compute_dtype) if x.dtype != compute_dtype else x
    wc = w_kn.astype(compute_dtype) if w_kn.dtype != compute_dtype else w_kn
    in_bytes = jnp.dtype(compute_dtype).itemsize
    out_bytes = jnp.dtype(out_dtype).itemsize

    # --- tile selection (padding-aware, VMEM-budget-aware) ---
    tm = _pick_tile(M, tm)
    tn = _pick_tile(Nw, tn)
    tk = _pick_tile(Kw, tk)
    tm, tn, tk = _shrink_to_fit(tm, tn, tk, in_bytes, out_bytes, _VMEM_BUDGET)

    Mp = _round_up(M, tm)
    Np = _round_up(Nw, tn)
    Kp = _round_up(Kw, tk)

    # v7x has 2 TensorCores: if both "parallel" axes collapsed to a single block,
    # split N in half (only when it stays 128-aligned with no extra padding) so
    # the megacore can shard work across both cores.
    if Mp // tm == 1 and Np // tn == 1 and tn % 256 == 0:
        tn //= 2

    # --- pad operands to tile multiples (zeros along K are exact no-ops) ---
    x_p = xc
    if (Mp, Kp) != (M, Kx):
        x_p = jnp.pad(xc, ((0, Mp - M), (0, Kp - Kx)))
    w_p = wc
    if (Kp, Np) != (Kw, Nw):
        w_p = jnp.pad(wc, ((0, Kp - Kw), (0, Np - Nw)))

    grid = (Mp // tm, Np // tn, Kp // tk)

    fp = _footprint_bytes(tm, tn, tk, in_bytes, out_bytes)
    vmem_limit = min(_VMEM_BUDGET, max(fp + (4 << 20), 16 << 20))

    cost = pl.CostEstimate(
        flops=2 * M * n_out * Kx,
        bytes_accessed=(Mp * Kp * in_bytes) * (Np // tn)
        + (Kp * Np * in_bytes) * (Mp // tm)
        + Mp * Np * out_bytes,
        transcendentals=0,
    )

    out_padded = pl.pallas_call(
        _mylinear_kernel,
        out_shape=jax.ShapeDtypeStruct((Mp, Np), out_dtype),
        grid_spec=pltpu.PrefetchScalarGridSpec(
            num_scalar_prefetch=0,
            grid=grid,
            in_specs=[
                pl.BlockSpec((tm, tk), lambda i, j, k: (i, k)),  # x tile
                pl.BlockSpec((tk, tn), lambda i, j, k: (k, j)),  # w tile (K, N)
            ],
            out_specs=pl.BlockSpec((tm, tn), lambda i, j, k: (i, j)),
            scratch_shapes=[pltpu.VMEM((tm, tn), jnp.float32)],
        ),
        compiler_params=pltpu.CompilerParams(
            dimension_semantics=("parallel", "parallel", "arbitrary"),
            vmem_limit_bytes=vmem_limit,
        ),
        cost_estimate=cost,
    )(x_p, w_p)

    if (Mp, Np) != (M, n_out):
        out_padded = out_padded[:M, :n_out]
    return out_padded


# ---------------------------------------------------------------------------
# Drop-in wrapper (PyTorch (N, K) weight layout) -- transposes per call.
# Prefer the MyLinear module below for repeated calls (it caches the layout).
# ---------------------------------------------------------------------------
def mylinear_forward(x, weight, *, tm=DEF_TM, tn=DEF_TN, tk=DEF_TK,
                     use_bf16=False):
    """y = x @ weight.T  (PyTorch nn.Linear semantics, no bias)."""
    N, K = weight.shape
    assert x.shape[1] == K, "input_features mismatch"
    w_kn = weight.T  # one-time layout change; cache via MyLinear to avoid per-call cost
    return _forward_kn(x, w_kn, n_out=N, tm=tm, tn=tn, tk=tk, use_bf16=use_bf16)


# ---------------------------------------------------------------------------
# Module-style wrapper: caches the weight in padded (K, N) MXU layout ONCE, so
# the forward path does no weight transpose/pad HBM round trips.
# ---------------------------------------------------------------------------
class MyLinear:
    def __init__(self, input_features, output_features, key, *,
                 dtype=jnp.float32, use_bf16=False, tn=DEF_TN, tk=DEF_TK):
        self.input_features = input_features
        self.output_features = output_features
        self.use_bf16 = use_bf16
        self._tn, self._tk = tn, tk
        # PyTorch-style parameter: (out_features, in_features), U(-0.1, 0.1)
        self.weight = jax.random.uniform(
            key, (output_features, input_features),
            minval=-0.1, maxval=0.1, dtype=dtype,
        )
        self.weight_kn = self._prepare(self.weight)

    def _prepare(self, weight):
        """Cache the (K, N) layout, padded to the tile grid, once (outside jit)."""
        N, K = weight.shape
        tn = _pick_tile(N, self._tn)
        tk = _pick_tile(K, self._tk)
        Np, Kp = _round_up(N, tn), _round_up(K, tk)
        w_kn = weight.T
        if self.use_bf16:
            w_kn = w_kn.astype(jnp.bfloat16)
        if (Kp, Np) != (K, N):
            w_kn = jnp.pad(w_kn, ((0, Kp - K), (0, Np - N)))
        return jax.block_until_ready(w_kn)

    def __call__(self, x):
        return _forward_kn(
            x, self.weight_kn, n_out=self.output_features,
            tn=self._tn, tk=self._tk, use_bf16=self.use_bf16,
        )


# TODO(synk): backward (grad_input = g @ W, grad_weight = g.T @ x from
# myLinearFunction.backward) is not part of the forward spec; left to JAX
# autodiff / a future pair of Pallas kernels.


if __name__ == "__main__":
    key = jax.random.PRNGKey(0)
    k_x, k_mod = jax.random.split(key)

    # Small shapes matching the module: batch=8, in=32, out=16.
    batch, input_features, output_features = 8, 32, 16
    layer = MyLinear(input_features, output_features, k_mod)
    x = jax.random.normal(k_x, (batch, input_features), dtype=jnp.float32)

    y = jax.block_until_ready(layer(x))
    y_ref = x @ layer.weight.T
    assert y.shape == (batch, output_features)
    assert jnp.allclose(y, y_ref, atol=1e-5, rtol=1e-5), "mismatch vs reference"

    # Non-tile-aligned shape through the drop-in (PyTorch-layout) wrapper:
    # exercises the reduced-padding clamp (tm=384 for M=300, tk=640 for K=513).
    k_x2, k_w2 = jax.random.split(k_x)
    x2 = jax.random.normal(k_x2, (300, 513), dtype=jnp.float32)
    w2 = jax.random.uniform(k_w2, (384, 513), minval=-0.1, maxval=0.1,
                            dtype=jnp.float32)
    y2 = jax.block_until_ready(mylinear_forward(x2, w2))
    y2_ref = x2 @ w2.T
    assert jnp.allclose(y2, y2_ref, atol=1e-4, rtol=1e-4), "mismatch (tiled path)"

    # Larger cached-layout path: exercises the K-reduction grid (Kp/tk = 2),
    # the megacore N split (grid (1, 2, 2)), and the zero-copy (no pad) weight.
    k_x3, k_w3 = jax.random.split(k_x2)
    layer3 = MyLinear(2048, 512, k_w3)
    x3 = jax.random.normal(k_x3, (256, 2048), dtype=jnp.float32)
    y3 = jax.block_until_ready(layer3(x3))
    y3_ref = jnp.matmul(x3, layer3.weight.T, precision=jax.lax.Precision.HIGHEST)
    assert y3.shape == (256, 512)
    assert jnp.allclose(y3, y3_ref, atol=1e-3, rtol=1e-3), "mismatch (multi-block)"

    print("KERNEL_OK")
</pallas_src>

<mosaic_0001>
module attributes {stable_mosaic.version = 11 : i64} {
  func.func @_mylinear_kernel(%arg0: i32, %arg1: i32, %arg2: i32, %arg3: memref<128x128xf32, #tpu.memory_space<vmem>>, %arg4: memref<128x128xf32, #tpu.memory_space<vmem>>, %arg5: memref<128x128xf32, #tpu.memory_space<vmem>>, %arg6: memref<128x128xf32, #tpu.memory_space<vmem>>) attributes {dimension_semantics = [#tpu.dimension_semantics<parallel>, #tpu.dimension_semantics<parallel>, #tpu.dimension_semantics<arbitrary>], iteration_bounds = array<i64: 1, 1, 1>, scalar_prefetch = 0 : i64, scratch_operands = 1 : i64, tpu.core_type = #tpu.core_type<tc>, window_params = [{transform_indices = @transform_0, window_bounds = array<i64: 128, 128>}, {transform_indices = @transform_1, window_bounds = array<i64: 128, 128>}, {transform_indices = @transform_2, window_bounds = array<i64: 128, 128>}]} {
    %c0_i32 = arith.constant 0 : i32
    %0 = arith.cmpi eq, %arg2, %c0_i32 : i32
    %1 = arith.extui %0 : i1 to i32
    %c0_i32_0 = arith.constant 0 : i32
    %2 = arith.cmpi ne, %1, %c0_i32_0 : i32
    scf.if %2 {
      %cst_10 = arith.constant 0.000000e+00 : f32
      %12 = vector.broadcast %cst_10 : f32 to vector<128x128xf32>
      %c0_11 = arith.constant 0 : index
      %c0_12 = arith.constant 0 : index
      %13 = vector.load %arg6[%c0_11, %c0_12] : memref<128x128xf32, #tpu.memory_space<vmem>>, vector<128x128xf32>
      tpu.vector_store %arg6[%c0_11, %c0_12], %12 {strides = array<i32>} : memref<128x128xf32, #tpu.memory_space<vmem>>, vector<128x128xf32>,
    } else {
    }
    %c0 = arith.constant 0 : index
    %c0_1 = arith.constant 0 : index
    %3 = vector.load %arg6[%c0, %c0_1] : memref<128x128xf32, #tpu.memory_space<vmem>>, vector<128x128xf32>
    %c0_2 = arith.constant 0 : index
    %c0_3 = arith.constant 0 : index
    %4 = vector.load %arg3[%c0_2, %c0_3] : memref<128x128xf32, #tpu.memory_space<vmem>>, vector<128x128xf32>
    %c0_4 = arith.constant 0 : index
    %c0_5 = arith.constant 0 : index
    %5 = vector.load %arg4[%c0_4, %c0_5] : memref<128x128xf32, #tpu.memory_space<vmem>>, vector<128x128xf32>
    %cst = arith.constant dense<0.000000e+00> : vector<128x128xf32>
    %6 = tpu.matmul %4, %5, %cst {dimension_numbers = #tpu.dot_dimension_numbers<[1], [0], [0], [1], [0, 0, 1, 1], [], []>} : vector<128x128xf32>, vector<128x128xf32>, vector<128x128xf32> -> vector<128x128xf32>
    %7 = arith.addf %3, %6 : vector<128x128xf32>
    %c0_6 = arith.constant 0 : index
    %c0_7 = arith.constant 0 : index
    %8 = vector.load %arg6[%c0_6, %c0_7] : memref<128x128xf32, #tpu.memory_space<vmem>>, vector<128x128xf32>
    tpu.vector_store %arg6[%c0_6, %c0_7], %7 {strides = array<i32>} : memref<128x128xf32, #tpu.memory_space<vmem>>, vector<128x128xf32>,
    %c0_i32_8 = arith.constant 0 : i32
    %9 = arith.cmpi eq, %arg2, %c0_i32_8 : i32
    %10 = arith.extui %9 : i1 to i32
    %c0_i32_9 = arith.constant 0 : i32
    %11 = arith.cmpi ne, %10, %c0_i32_9 : i32
    scf.if %11 {
      %c0_10 = arith.constant 0 : index
      %c0_11 = arith.constant 0 : index
      %12 = vector.load %arg6[%c0_10, %c0_11] : memref<128x128xf32, #tpu.memory_space<vmem>>, vector<128x128xf32>
      %c0_12 = arith.constant 0 : index
      %c0_13 = arith.constant 0 : index
      %13 = vector.load %arg5[%c0_12, %c0_13] : memref<128x128xf32, #tpu.memory_space<vmem>>, vector<128x128xf32>
      tpu.vector_store %arg5[%c0_12, %c0_13], %12 {strides = array<i32>} : memref<128x128xf32, #tpu.memory_space<vmem>>, vector<128x128xf32>,
    } else {
    }
    return
  }
  func.func @transform_0(%arg0: i32, %arg1: i32, %arg2: i32) -> (i32, i32) {
    %c0_i32 = arith.constant 0 : i32
    return %arg0, %arg2 : i32, i32
  }
  func.func @transform_1(%arg0: i32, %arg1: i32, %arg2: i32) -> (i32, i32) {
    %c0_i32 = arith.constant 0 : i32
    return %arg2, %arg1 : i32, i32
  }
  func.func @transform_2(%arg0: i32, %arg1: i32, %arg2: i32) -> (i32, i32) {
    %c0_i32 = arith.constant 0 : i32
    return %arg0, %arg1 : i32, i32
  }
}

</mosaic_0001>

<bundles_post_ra>
// kernel: _forward_kn.1
= control target key start
LH: loop header
LB: loop body
LE: loop exit
PB: predicated region body
PF: predicated region fallthrough
CT: control target
= control target key end

     0   :  { %s574_s1 = inlined_call_operand.vmem [shape: f32[128,128], index: 1, kind: input, shape index: {}]   ;;  %s575_s0 = inlined_call_operand.vmem [shape: f32[128,128], index: 0, kind: input, shape index: {}]   ;;  %s576_s2 = inlined_call_operand.vmem [shape: f32[128,128], index: 2, kind: output, shape index: {}]  }
   0x1   :  { %v78_v0 = vld [vmem:[%s574_s1 + $0x78] sm:$0xff]  ;;  %v77_v1 = vld [vmem:[%s574_s1 + $0x70] sm:$0xff]  ;;  %v76_v2 = vld [vmem:[%s574_s1 + $0x68] sm:$0xff] }
   0x2   :  { %327 = vmatprep.subr.mxu0 %v78_v0  ;;  %383 = vmatprep.subr.mxu1 %v78_v0  ;;  %v75_v3 = vld [vmem:[%s574_s1 + $0x60] sm:$0xff]  ;;  %v74_v4 = vld [vmem:[%s574_s1 + $0x58] sm:$0xff]  ;;  %v73_v5 = vld [vmem:[%s574_s1 + $0x50] sm:$0xff] }
   0x3   :  { %328 = vmatpush3.msra.mxu0 %v78_v0  ;;  %399 = vmatpush3.msra.mxu1 %v78_v0  ;;  %v72_v6 = vld [vmem:[%s574_s1 + $0x48] sm:$0xff]  ;;  %v71_v7 = vld [vmem:[%s574_s1 + $0x40] sm:$0xff]  ;;  %v70_v8 = vld [vmem:[%s574_s1 + $0x38] sm:$0xff] }
   0x4   :  { %329 = vmatprep.subr.mxu0 %v77_v1  ;;  %384 = vmatprep.subr.mxu1 %v77_v1  ;;  %v69_v9 = vld [vmem:[%s574_s1 + $0x30] sm:$0xff]  ;;  %v68_v10 = vld [vmem:[%s574_s1 + $0x28] sm:$0xff]  ;;  %v67_v11 = vld [vmem:[%s574_s1 + $0x20] sm:$0xff] }
   0x5   :  { %330 = vmatpush3.msra.mxu0 %v77_v1  ;;  %400 = vmatpush3.msra.mxu1 %v77_v1  ;;  %v66_v12 = vld [vmem:[%s574_s1 + $0x18] sm:$0xff]  ;;  %v65_v13 = vld [vmem:[%s574_s1 + $0x10] sm:$0xff]  ;;  %v64_v14 = vld [vmem:[%s574_s1 + $0x8] sm:$0xff] }
   0x6   :  { %331 = vmatprep.subr.mxu0 %v76_v2  ;;  %385 = vmatprep.subr.mxu1 %v76_v2  ;;  %v63_v15 = vld [vmem:[%s574_s1] sm:$0xff]  ;;  %v48_v18 = vld [vmem:[%s575_s0 + $0x8] sm:$0xff]  ;;  %v49_v20 = vld [vmem:[%s575_s0 + $0x10] sm:$0xff] }
   0x7   :  { %332 = vmatpush3.msra.mxu0 %v76_v2  ;;  %401 = vmatpush3.msra.mxu1 %v76_v2  ;;  %v47_v16 = vld [vmem:[%s575_s0] sm:$0xff]  ;;  %v56_v19 = vld [vmem:[%s575_s0 + $0x48] sm:$0xff]  ;;  %v57_v21 = vld [vmem:[%s575_s0 + $0x50] sm:$0xff] }
   0x8   :  { %333 = vmatprep.subr.mxu0 %v75_v3  ;;  %386 = vmatprep.subr.mxu1 %v75_v3  ;;  %v55_v17 = vld [vmem:[%s575_s0 + $0x40] sm:$0xff]  ;;  %v50_v22 = vld [vmem:[%s575_s0 + $0x18] sm:$0xff]  ;;  %v52_v26 = vld [vmem:[%s575_s0 + $0x28] sm:$0xff] }
   0x9   :  { %334 = vmatpush3.msra.mxu0 %v75_v3  ;;  %402 = vmatpush3.msra.mxu1 %v75_v3  ;;  %v58_v23 = vld [vmem:[%s575_s0 + $0x58] sm:$0xff]  ;;  %v51_v24 = vld [vmem:[%s575_s0 + $0x20] sm:$0xff]  ;;  %v60_v27 = vld [vmem:[%s575_s0 + $0x68] sm:$0xff] }
   0xa   :  { %335 = vmatprep.subr.mxu0 %v74_v4  ;;  %387 = vmatprep.subr.mxu1 %v74_v4  ;;  %v59_v25 = vld [vmem:[%s575_s0 + $0x60] sm:$0xff]  ;;  %v53_v28 = vld [vmem:[%s575_s0 + $0x30] sm:$0xff]  ;;  %v54_v30 = vld [vmem:[%s575_s0 + $0x38] sm:$0xff] }
   0xb   :  { %336 = vmatpush3.msra.mxu0 %v74_v4  ;;  %403 = vmatpush3.msra.mxu1 %v74_v4  ;;  %v61_v29 = vld [vmem:[%s575_s0 + $0x70] sm:$0xff]  ;;  %v62_v31 = vld [vmem:[%s575_s0 + $0x78] sm:$0xff] }
   0xc   :  { %337 = vmatprep.subr.mxu0 %v73_v5  ;;  %388 = vmatprep.subr.mxu1 %v73_v5 }
   0xd   :  { %338 = vmatpush3.msra.mxu0 %v73_v5  ;;  %404 = vmatpush3.msra.mxu1 %v73_v5 }
   0xe   :  { %339 = vmatprep.subr.mxu0 %v72_v6  ;;  %389 = vmatprep.subr.mxu1 %v72_v6 }
   0xf   :  { %340 = vmatpush3.msra.mxu0 %v72_v6  ;;  %405 = vmatpush3.msra.mxu1 %v72_v6 }
  0x10   :  { %341 = vmatprep.subr.mxu0 %v71_v7  ;;  %390 = vmatprep.subr.mxu1 %v71_v7 }
  0x11   :  { %342 = vmatpush3.msra.mxu0 %v71_v7  ;;  %406 = vmatpush3.msra.mxu1 %v71_v7 }
  0x12   :  { %343 = vmatprep.subr.mxu0 %v70_v8  ;;  %391 = vmatprep.subr.mxu1 %v70_v8 }
  0x13   :  { %344 = vmatpush3.msra.mxu0 %v70_v8  ;;  %407 = vmatpush3.msra.mxu1 %v70_v8 }
  0x14   :  { %345 = vmatprep.subr.mxu0 %v69_v9  ;;  %392 = vmatprep.subr.mxu1 %v69_v9 }
  0x15   :  { %346 = vmatpush3.msra.mxu0 %v69_v9  ;;  %408 = vmatpush3.msra.mxu1 %v69_v9 }
  0x16   :  { %347 = vmatprep.subr.mxu0 %v68_v10  ;;  %393 = vmatprep.subr.mxu1 %v68_v10 }
  0x17   :  { %348 = vmatpush3.msra.mxu0 %v68_v10  ;;  %409 = vmatpush3.msra.mxu1 %v68_v10 }
  0x18   :  { %349 = vmatprep.subr.mxu0 %v67_v11  ;;  %394 = vmatprep.subr.mxu1 %v67_v11 }
  0x19   :  { %350 = vmatpush3.msra.mxu0 %v67_v11  ;;  %410 = vmatpush3.msra.mxu1 %v67_v11 }
  0x1a   :  { %351 = vmatprep.subr.mxu0 %v66_v12  ;;  %395 = vmatprep.subr.mxu1 %v66_v12 }
  0x1b   :  { %352 = vmatpush3.msra.mxu0 %v66_v12  ;;  %411 = vmatpush3.msra.mxu1 %v66_v12 }
  0x1c   :  { %353 = vmatprep.subr.mxu0 %v65_v13  ;;  %396 = vmatprep.subr.mxu1 %v65_v13 }
  0x1d   :  { %354 = vmatpush3.msra.mxu0 %v65_v13  ;;  %412 = vmatpush3.msra.mxu1 %v65_v13 }
  0x1e   :  { %355 = vmatprep.subr.mxu0 %v64_v14  ;;  %397 = vmatprep.subr.mxu1 %v64_v14 }
  0x1f   :  { %356 = vmatpush3.msra.mxu0 %v64_v14  ;;  %413 = vmatpush3.msra.mxu1 %v64_v14 }
  0x20   :  { %357 = vmatprep.subr.mxu0 %v63_v15  ;;  %398 = vmatprep.subr.mxu1 %v63_v15 }
  0x21   :  { %358 = vmatpush3.msra.mxu0 %v63_v15  ;;  %414 = vmatpush3.msra.mxu1 %v63_v15 }
  0x22   :  { %359 = vmatprep.mubr.f32.mxu0 %v47_v16  ;;  %371 = vmatprep.mubr.f32.mxu1 %v55_v17 }
  0x23   :  { %360 = vmatmul.mubr.f32.vlgmr.msra.gmra.mxu0 %v48_v18  ;;  %372 = vmatmul.mubr.f32.vlgmr.msra.gmra.mxu1 %v56_v19 }
  0x24   :  { %362 = vmatprep.mubr.f32.mxu0 %v49_v20  ;;  %374 = vmatprep.mubr.f32.mxu1 %v57_v21 }
  0x27   :  { %363 = vmatmul.mubr.f32.gmra.mxu0 %v50_v22  ;;  %375 = vmatmul.mubr.f32.gmra.mxu1 %v58_v23 }
  0x28   :  { %365 = vmatprep.mubr.f32.mxu0 %v51_v24  ;;  %377 = vmatprep.mubr.f32.mxu1 %v59_v25 }
  0x2b   :  { %366 = vmatmul.mubr.f32.gmra.mxu0 %v52_v26  ;;  %378 = vmatmul.mubr.f32.gmra.mxu1 %v60_v27 }
  0x2c   :  { %368 = vmatprep.mubr.f32.mxu0 %v53_v28  ;;  %380 = vmatprep.mubr.f32.mxu1 %v61_v29 }
  0x2f   :  { %369 = vmatmul.mubr.f32.gmra.mxu0 %v54_v30  ;;  %381 = vmatmul.mubr.f32.gmra.mxu1 %v62_v31 }
  0xe3   :  { %v361_v32 = vpop.f32.mrf.mxu0  ;;  %v373_v33 = vpop.f32.mrf.mxu1 }
  0xe4   :  { %276 = vst [vmem:[%s576_s2 + $0x8] sm:$0xff] %v361_v32  ;;  %284 = vst [vmem:[%s576_s2 + $0x48] sm:$0xff] %v373_v33 }
  0xe5   :  { %v145_v34 = vpop.f32.mrf.mxu0  ;;  %v185_v35 = vpop.f32.mrf.mxu1 }
  0xe6   :  { %275 = vst [vmem:[%s576_s2] sm:$0xff] %v145_v34  ;;  %283 = vst [vmem:[%s576_s2 + $0x40] sm:$0xff] %v185_v35 }
  0xe7   :  { %v364_v36 = vpop.f32.mrf.mxu0  ;;  %v376_v37 = vpop.f32.mrf.mxu1 }
  0xe8   :  { %278 = vst [vmem:[%s576_s2 + $0x18] sm:$0xff] %v364_v36  ;;  %286 = vst [vmem:[%s576_s2 + $0x58] sm:$0xff] %v376_v37 }
  0xe9   :  { %v155_v38 = vpop.f32.mrf.mxu0  ;;  %v195_v39 = vpop.f32.mrf.mxu1 }
  0xea   :  { %277 = vst [vmem:[%s576_s2 + $0x10] sm:$0xff] %v155_v38  ;;  %285 = vst [vmem:[%s576_s2 + $0x50] sm:$0xff] %v195_v39 }
  0xeb   :  { %v367_v40 = vpop.f32.mrf.mxu0  ;;  %v379_v41 = vpop.f32.mrf.mxu1 }
  0xec   :  { %280 = vst [vmem:[%s576_s2 + $0x28] sm:$0xff] %v367_v40  ;;  %288 = vst [vmem:[%s576_s2 + $0x68] sm:$0xff] %v379_v41 }
  0xed   :  { %v165_v42 = vpop.f32.mrf.mxu0  ;;  %v205_v43 = vpop.f32.mrf.mxu1 }
  0xee   :  { %279 = vst [vmem:[%s576_s2 + $0x20] sm:$0xff] %v165_v42  ;;  %287 = vst [vmem:[%s576_s2 + $0x60] sm:$0xff] %v205_v43 }
  0xef   :  { %v370_v44 = vpop.f32.mrf.mxu0  ;;  %v382_v45 = vpop.f32.mrf.mxu1 }
  0xf0   :  { %282 = vst [vmem:[%s576_s2 + $0x38] sm:$0xff] %v370_v44  ;;  %290 = vst [vmem:[%s576_s2 + $0x78] sm:$0xff] %v382_v45 }
  0xf1   :  { %v175_v46 = vpop.f32.mrf.mxu0  ;;  %v215_v47 = vpop.f32.mrf.mxu1 }
  0xf2   :  { %281 = vst [vmem:[%s576_s2 + $0x30] sm:$0xff] %v175_v46  ;;  %289 = vst [vmem:[%s576_s2 + $0x70] sm:$0xff] %v215_v47 }

</bundles_post_ra>
